<compile_context>
chip_gen: v5e
topology: v5e:2x2
jax: 0.10.0
libtpu: 0.0.40
codegen_flags: <defaults>
</compile_context>

<pallas_src>
import jax
import jax.numpy as jnp
from jax.experimental import pallas as pl
from jax.experimental.pallas import tpu as pltpu


def _copy_kernel(x_ref, o_ref):
    # Identity copy of the current tile (the whole "hot path" of a view op).
    o_ref[...] = x_ref[...]


def _pick_slab_width(total):
    """Widest lane-dense (multiple of 128) slab width dividing `total`."""
    for col in (1024, 512, 256, 128):
        if total % col == 0:
            return col
    return None


def unflatten(x, C, H, W):
    """Pallas-backed equivalent of Unflatten.forward.

    x: (N, C*H*W) array. Returns (N, C, H, W) with torch.view semantics.
    """
    N, F = x.shape
    assert F == C * H * W, f"expected last dim {C * H * W}, got {F}"

    total = N * F
    itemsize = jnp.dtype(x.dtype).itemsize

    col = _pick_slab_width(total)
    if col is None:
        # Total element count not a multiple of 128: fall back to the native
        # (N, F) layout with full-extent blocks (always satisfies the (8,128)
        # rule since the block equals the full array dims).
        # TODO(synk): tile rows here too if such shapes ever get large.
        slab = x
        rows, col = N, F
        row_tile = rows
    else:
        rows = total // col
        slab = x.reshape(rows, col)  # metadata-only reshape of contiguous data

        # Target ~1 MiB per buffer: double-buffered input + output ~= 4x tile.
        target_rows = max(8, (((1 << 20) // max(1, col * itemsize)) // 8) * 8)
        row_tile = rows if rows <= target_rows else target_rows

    grid = (pl.cdiv(rows, row_tile),)

    flat = pl.pallas_call(
        _copy_kernel,
        out_shape=jax.ShapeDtypeStruct((rows, col), x.dtype),
        grid=grid,
        in_specs=[pl.BlockSpec((row_tile, col), lambda i: (i, 0))],
        out_specs=pl.BlockSpec((row_tile, col), lambda i: (i, 0)),
        # Alias input buffer 0 to output 0: no second HBM allocation for what
        # is semantically a view.
        input_output_aliases={0: 0},
        cost_estimate=pl.CostEstimate(
            flops=0,
            transcendentals=0,
            bytes_accessed=2 * total * itemsize,
        ),
        compiler_params=pltpu.CompilerParams(
            dimension_semantics=("parallel",),
        ),
    )(slab)

    # Row-major reshape, exactly torch.view(N, C, H, W) semantics (NCHW).
    return flat.reshape(N, C, H, W)


if __name__ == "__main__":
    key = jax.random.PRNGKey(0)

    # Case 1: the module's default parameters (C=128, H=7, W=7), small batch.
    N1, C1, H1, W1 = 2, 128, 7, 7  # F = 6272, total = 12544 (49 x 256 slab)
    x1 = jax.random.normal(key, (N1, C1 * H1 * W1), dtype=jnp.float32)
    y1 = unflatten(x1, C1, H1, W1)
    jax.block_until_ready(y1)
    ref1 = x1.reshape(N1, C1, H1, W1)
    assert y1.shape == (N1, C1, H1, W1)
    assert y1.dtype == x1.dtype
    assert jnp.array_equal(y1, ref1)

    # Case 2: tiny lane-friendly shape.
    N2, C2, H2, W2 = 2, 4, 8, 8  # F = 256, total = 512 (4 x 128 slab)
    x2 = jax.random.normal(jax.random.PRNGKey(1), (N2, C2 * H2 * W2),
                           dtype=jnp.float32)
    y2 = unflatten(x2, C2, H2, W2)
    jax.block_until_ready(y2)
    ref2 = x2.reshape(N2, C2, H2, W2)
    assert y2.shape == (N2, C2, H2, W2)
    assert y2.dtype == x2.dtype
    assert jnp.array_equal(y2, ref2)

    print("KERNEL_OK")
</pallas_src>

<mosaic_0001>
module attributes {stable_mosaic.version = 11 : i64} {
  func.func @_copy_kernel(%arg0: i32, %arg1: memref<49x256xf32, #tpu.memory_space<vmem>>, %arg2: memref<49x256xf32, #tpu.memory_space<vmem>>) attributes {dimension_semantics = [#tpu.dimension_semantics<parallel>], iteration_bounds = array<i64: 1>, scalar_prefetch = 0 : i64, scratch_operands = 0 : i64, tpu.core_type = #tpu.core_type<tc>, window_params = [{transform_indices = @transform_0, window_bounds = array<i64: 49, 256>}, {transform_indices = @transform_1, window_bounds = array<i64: 49, 256>}]} {
    %c0 = arith.constant 0 : index
    %c0_0 = arith.constant 0 : index
    %0 = vector.load %arg1[%c0, %c0_0] : memref<49x256xf32, #tpu.memory_space<vmem>>, vector<49x256xf32>
    %c0_1 = arith.constant 0 : index
    %c0_2 = arith.constant 0 : index
    %1 = vector.load %arg2[%c0_1, %c0_2] : memref<49x256xf32, #tpu.memory_space<vmem>>, vector<49x256xf32>
    tpu.vector_store %arg2[%c0_1, %c0_2], %0 {strides = array<i32>} : memref<49x256xf32, #tpu.memory_space<vmem>>, vector<49x256xf32>,
    return
  }
  func.func @transform_0(%arg0: i32) -> (i32, i32) {
    %c0_i32 = arith.constant 0 : i32
    %c0_i32_0 = arith.constant 0 : i32
    return %arg0, %c0_i32 : i32, i32
  }
  func.func @transform_1(%arg0: i32) -> (i32, i32) {
    %c0_i32 = arith.constant 0 : i32
    %c0_i32_0 = arith.constant 0 : i32
    return %arg0, %c0_i32 : i32, i32
  }
}

</mosaic_0001>

<bundles_post_ra>
// kernel: tpu_custom_call.1
= control target key start
LH: loop header
LB: loop body
LE: loop exit
PB: predicated region body
PF: predicated region fallthrough
CT: control target
= control target key end

     0   :  { %6 = vsyncpa [#allocation3], 0  ;;  %s154_s0 = inlined_call_operand.hbm [shape: f32[49,256], index: 0, kind: input, shape index: {}, may-alias: {0,1}]   ;;  %s155_s1 = inlined_call_operand.hbm [shape: f32[49,256], index: 1, kind: output, shape index: {}, may-alias: {0,1}]  }
   0x1   :  { %7 = vsyncpa [#allocation4], 0  ;;  %s12_s8 = sshll.u32 %s154_s0, 4  ;;  %s128_s9 = smov [#allocation2]   ;;  %s13_s8 = int_to_ptr.hbm [resolvable:$true] %s12_s8 }
   0x2   :  { %s14_s10 = sshll.u32 %s128_s9, 4  ;;  %s129_s11 = smov 256   ;;  %s15_s10 = int_to_ptr.vmem [resolvable:$true] %s14_s10 }
   0x3   :  { %s130_s12 = smov 16  }
   0x4   :  { %20 = dma.hbm_to_vmem [thread:$0]  %s13_s8, 1792, %s15_s10, [#allocation3], %s129_s11, %s129_s11, %s130_s12  }
   0x5   :  { %124 = dma.done.wait [#allocation3], 1792  }
   0x6   :  { %125 = vsyncadd [#allocation3], 4294965504  ;;  %v25_v0 = vld [vmem:[#allocation2] sm:$0xff]  ;;  %v26_v1 = vld [vmem:[#allocation2 + $0x8] sm:$0xff]  ;;  %s131_s0 = smov [#allocation5]   ;;  %s59_s16 = sshll.u32 %s155_s1, 4  ;;  %s60_s16 = int_to_ptr.hbm [resolvable:$true] %s59_s16 }
   0x7   :  { %v27_v2 = vld [vmem:[#allocation2 + $0x10] sm:$0xff]  ;;  %39 = vst [vmem:[#allocation5] sm:$0xff] %v25_v0  ;;  %v28_v3 = vld [vmem:[#allocation2 + $0x18] sm:$0xff]  ;;  %v29_v4 = vld [vmem:[#allocation2 + $0x20] sm:$0xff]  ;;  %s57_s13 = sshll.u32 %s131_s0, 4  ;;  %s58_s13 = int_to_ptr.vmem [resolvable:$true] %s57_s13 }
   0x8   :  { %40 = vst [vmem:[#allocation5 + $0x8] sm:$0xff] %v26_v1  ;;  %v30_v5 = vld [vmem:[#allocation2 + $0x28] sm:$0xff]  ;;  %v31_v6 = vld [vmem:[#allocation2 + $0x30] sm:$0xff]  ;;  %v32_v7 = vld [vmem:[#allocation2 + $0x38] sm:$0xff] }
   0x9   :  { %41 = vst [vmem:[#allocation5 + $0x10] sm:$0xff] %v27_v2  ;;  %v33_v8 = vld [vmem:[#allocation2 + $0x40] sm:$0xff]  ;;  %v34_v9 = vld [vmem:[#allocation2 + $0x48] sm:$0xff]  ;;  %v35_v10 = vld [vmem:[#allocation2 + $0x50] sm:$0xff] }
   0xa   :  { %42 = vst [vmem:[#allocation5 + $0x18] sm:$0xff] %v28_v3  ;;  %v36_v11 = vld [vmem:[#allocation2 + $0x58] sm:$0xff]  ;;  %v37_v12 = vld [vmem:[#allocation2 + $0x60] sm:$0x1]  ;;  %v38_v13 = vld [vmem:[#allocation2 + $0x68] sm:$0x1] }
   0xb   :  { %43 = vst [vmem:[#allocation5 + $0x20] sm:$0xff] %v29_v4 }
   0xc   :  { %44 = vst [vmem:[#allocation5 + $0x28] sm:$0xff] %v30_v5 }
   0xd   :  { %45 = vst [vmem:[#allocation5 + $0x30] sm:$0xff] %v31_v6 }
   0xe   :  { %46 = vst [vmem:[#allocation5 + $0x38] sm:$0xff] %v32_v7 }
   0xf   :  { %47 = vst [vmem:[#allocation5 + $0x40] sm:$0xff] %v33_v8 }
  0x10   :  { %48 = vst [vmem:[#allocation5 + $0x48] sm:$0xff] %v34_v9 }
  0x11   :  { %49 = vst [vmem:[#allocation5 + $0x50] sm:$0xff] %v35_v10 }
  0x12   :  { %50 = vst [vmem:[#allocation5 + $0x58] sm:$0xff] %v36_v11 }
  0x13   :  { %51 = vst [vmem:[#allocation5 + $0x60] sm:$0x1] %v37_v12 }
  0x14   :  { %52 = vst [vmem:[#allocation5 + $0x68] sm:$0x1] %v38_v13 }
  0x15   :  { %65 = dma.vmem_to_hbm [thread:$0]  %s58_s13, 1792, %s60_s16, [#allocation4], %s129_s11, %s129_s11, %s130_s12  }
  0x16   :  { %126 = dma.done.wait [#allocation4], 1792  }
  0x17   :  { %127 = vsyncadd [#allocation4], 4294965504 }
  0x18   :  { %70 = vsyncpa [#allocation3], 1 }
  0x19   :  { %71 = vsyncpa [#allocation4], 1 }

</bundles_post_ra>
